<compile_context>
chip_gen: v6e
topology: v6e:2x2x1
jax: 0.10.0
libtpu: 0.0.40
codegen_flags: <defaults>
</compile_context>

<pallas_src>
import functools

import numpy as np
import jax
import jax.numpy as jnp
from jax.experimental import pallas as pl
from jax.experimental.pallas import tpu as pltpu

# Module configuration (defaults of DConvTranspose2d)
IN_CH = 16
OUT_CH = 32
GROUPS = 2
K = 3
PAD = 1          # transposed-conv padding
STRIDE = 1
DIL = 1
KPL = OUT_CH // IN_CH          # kernels_per_layer = 2
MID_CH = IN_CH * KPL           # 32


def _dconvt_kernel(w_ref, b_ref, x_ref, o_ref, *, width):
    """Fused depthwise-T + pointwise ConvTranspose2d for one image.

    w_ref: (K*K, Cout, Cin)  per-tap fused weights (tap order kh*K + kw)
    b_ref: (Cout, 1)         fused bias, f32
    x_ref: (Cin, F)          flattened image with (W+1) zero guards per side,
                             F = H*W + 2*W + 2
    o_ref: (Cout, L)         lane-dense output tile, L = H*W (pixels on lanes)
    """
    cout, L = o_ref.shape

    # Column index of every output pixel: masks the kw=0 / kw=K-1 taps at the
    # width boundary (the guard-pad handles the height boundary).  VPU-only.
    col = jax.lax.broadcasted_iota(jnp.int32, (1, L), 1) % width
    not_first_col = col != 0
    not_last_col = col != width - 1

    xv = x_ref[...]                                   # (Cin, F), loaded once
    acc = jnp.zeros((cout, L), jnp.float32)
    for kh in range(K):
        for kw in range(K):
            off = kh * width + kw                     # static contiguous lane offset
            tap = xv[:, off:off + L]                  # (Cin, L) — no reshape needed
            if kw == 0:
                tap = jnp.where(not_first_col, tap, 0)
            elif kw == K - 1:
                tap = jnp.where(not_last_col, tap, 0)
            acc += jnp.dot(w_ref[kh * K + kw], tap,
                           preferred_element_type=jnp.float32)
    o_ref[...] = (acc + b_ref[...]).astype(o_ref.dtype)


@functools.partial(jax.jit, static_argnames=("compute_dtype",))
def dconv_transpose2d(x_nchw, w_taps, b_fused, *, compute_dtype=jnp.bfloat16):
    """x_nchw: (N, Cin, H, W); w_taps: (K*K, Cout, Cin); b_fused: (Cout,).
    Returns (N, Cout, H, W) float32."""
    N, Cin, H, W = x_nchw.shape
    KK, Cout, _ = w_taps.shape
    L = H * W

    # stride=1, dil=1: transposed conv == "same" conv with the flipped kernel and
    # an effective zero border of pad_eff = dil*(K-1) - PAD per side.
    # TODO(synk): generalize to stride>1 / output_padding / other paddings (defaults only).
    pad_eff = DIL * (K - 1) - PAD
    assert STRIDE == 1 and DIL == 1 and pad_eff == 1

    # The ONLY wrapper-side data movement: cast to compute dtype and add a
    # (W + pad_eff)-element zero guard on the flattened pixel axis.  A bordered
    # top/bottom zero row flattens to exactly W zeros, so every 3x3 tap of the
    # "same" conv becomes a contiguous slice xfp[:, kh*W+kw : kh*W+kw+L].
    x_flat = x_nchw.astype(compute_dtype).reshape(N, Cin, L)
    guard = W + pad_eff
    xfp = jnp.pad(x_flat, ((0, 0), (0, 0), (guard, guard)))
    F = xfp.shape[-1]

    w_c = w_taps.astype(compute_dtype)
    b2 = b_fused.reshape(Cout, 1).astype(jnp.float32)

    kernel = functools.partial(_dconvt_kernel, width=W)

    out = pl.pallas_call(
        kernel,
        out_shape=jax.ShapeDtypeStruct((N, Cout, L), jnp.float32),
        grid=(N,),
        in_specs=[
            pl.BlockSpec((KK, Cout, Cin), lambda n: (0, 0, 0)),   # resident fused weights
            pl.BlockSpec((Cout, 1), lambda n: (0, 0)),            # fused bias
            pl.BlockSpec((None, Cin, F), lambda n: (n, 0, 0)),    # one image per step
        ],
        out_specs=pl.BlockSpec((None, Cout, L), lambda n: (n, 0, 0)),
        compiler_params=pltpu.CompilerParams(
            dimension_semantics=("parallel",)),
        # TODO(synk): for very large H*W (or N==1), tile rows into halo'd strips
        # (grid=(N, H//TH), TM=TH*W multiple of 128) and budget VMEM for v7x's
        # 64 MiB via vmem_limit_bytes; at these shapes one image/step is ~10 KiB.
    )(w_c, b2, xfp)

    return out.reshape(N, Cout, H, W)     # free reshape — no transpose


def build_fused_weights(Wd, bd, Wp, bp):
    """Fuse grouped depthwise-transposed conv + 1x1 pointwise conv into per-tap weights.

    Wd: (Cin, Cmid/groups, K, K)  PyTorch ConvTranspose2d layout (in, out/groups, kh, kw)
    bd: (Cmid,)
    Wp: (Cmid, Cout, 1, 1)
    bp: (Cout,)
    Returns w_taps (K*K, Cout, Cin) with tap order (kh, kw), and b_fused (Cout,).
    """
    Wd = np.asarray(Wd, np.float32)
    Wp = np.asarray(Wp, np.float32)
    bd = np.asarray(bd, np.float32)
    bp = np.asarray(bp, np.float32)
    Cin = Wd.shape[0]
    ocg = Wd.shape[1]
    icg = Cin // GROUPS

    # Spatially-flipped, block-diagonal (grouped) depthwise-T weights: (K, K, Cin, Cmid)
    Cmid = ocg * GROUPS
    wd_eff = np.zeros((K, K, Cin, Cmid), np.float32)
    for g in range(GROUPS):
        for kh in range(K):
            for kw in range(K):
                wd_eff[kh, kw, g * icg:(g + 1) * icg, g * ocg:(g + 1) * ocg] = \
                    Wd[g * icg:(g + 1) * icg, :, K - 1 - kh, K - 1 - kw]
    wp_eff = Wp[:, :, 0, 0]                                    # (Cmid, Cout)

    w_taps = np.einsum('hwim,mo->hwoi', wd_eff, wp_eff)        # (K, K, Cout, Cin)
    w_taps = np.ascontiguousarray(w_taps.reshape(K * K, -1, Cin))
    b_fused = bd @ wp_eff + bp                                 # (Cout,)
    return jnp.asarray(w_taps), jnp.asarray(b_fused)


def reference_forward_np(x, Wd, bd, Wp, bp):
    """Independent numpy reference implementing ConvTranspose2d semantics directly."""
    x = np.asarray(x, np.float64)
    Wd = np.asarray(Wd, np.float64)
    Wp = np.asarray(Wp, np.float64)
    bd = np.asarray(bd, np.float64)
    bp = np.asarray(bp, np.float64)
    N, Cin, H, W = x.shape
    icg = Cin // GROUPS
    ocg = Wd.shape[1]
    Cmid = ocg * GROUPS
    Hfull = (H - 1) * STRIDE + DIL * (K - 1) + 1
    Wfull = (W - 1) * STRIDE + DIL * (K - 1) + 1
    full = np.zeros((N, Cmid, Hfull, Wfull))
    for g in range(GROUPS):
        xg = x[:, g * icg:(g + 1) * icg]
        wg = Wd[g * icg:(g + 1) * icg]
        for kh in range(K):
            for kw in range(K):
                contrib = np.einsum('nihw,io->nohw', xg, wg[:, :, kh, kw])
                full[:, g * ocg:(g + 1) * ocg,
                     kh * DIL:kh * DIL + H, kw * DIL:kw * DIL + W] += contrib
    Hout = Hfull - 2 * PAD
    Wout = Wfull - 2 * PAD
    mid = full[:, :, PAD:PAD + Hout, PAD:PAD + Wout] + bd[None, :, None, None]
    out = np.einsum('nchw,co->nohw', mid, Wp[:, :, 0, 0]) + bp[None, :, None, None]
    return out


if __name__ == "__main__":
    key = jax.random.PRNGKey(0)
    k1, k2, k3, k4, k5 = jax.random.split(key, 5)

    N, H, W = 2, 16, 16
    x = jax.random.normal(k1, (N, IN_CH, H, W), jnp.float32)

    # Deterministic parameter init (shapes follow nn.ConvTranspose2d layouts).
    Wd = jax.random.normal(k2, (IN_CH, MID_CH // GROUPS, K, K), jnp.float32) * 0.1
    bd = jax.random.normal(k3, (MID_CH,), jnp.float32) * 0.1
    Wp = jax.random.normal(k4, (MID_CH, OUT_CH, 1, 1), jnp.float32) * 0.1
    bp = jax.random.normal(k5, (OUT_CH,), jnp.float32) * 0.1

    w_taps, b_fused = build_fused_weights(Wd, bd, Wp, bp)
    ref = reference_forward_np(x, Wd, bd, Wp, bp)

    # f32 compute path (tight check against reference ConvTranspose2d math).
    out_f32 = jax.block_until_ready(
        dconv_transpose2d(x, w_taps, b_fused, compute_dtype=jnp.float32))
    if not np.allclose(np.asarray(out_f32), ref, atol=1e-3, rtol=1e-3):
        raise AssertionError("f32 Pallas kernel does not match reference ConvTranspose2d math")

    # bf16 default path (f32 MXU accumulation); looser tolerance covers bf16 rounding.
    out_bf16 = jax.block_until_ready(dconv_transpose2d(x, w_taps, b_fused))
    if not np.allclose(np.asarray(out_bf16), ref, atol=3e-2, rtol=3e-2):
        raise AssertionError("bf16 Pallas kernel does not match reference ConvTranspose2d math")

    print("KERNEL_OK")
</pallas_src>

<mosaic_0001>
module attributes {stable_mosaic.version = 11 : i64} {
  func.func @_dconvt_kernel(%arg0: i32, %arg1: memref<9x32x16xf32, #tpu.memory_space<vmem>>, %arg2: memref<32x1xf32, #tpu.memory_space<vmem>>, %arg3: memref<1x16x290xf32, #tpu.memory_space<vmem>>, %arg4: memref<1x32x256xf32, #tpu.memory_space<vmem>>) attributes {dimension_semantics = [#tpu.dimension_semantics<parallel>], iteration_bounds = array<i64: 2>, scalar_prefetch = 0 : i64, scratch_operands = 0 : i64, tpu.core_type = #tpu.core_type<tc>, window_params = [{pipeline_mode = #tpu.pipeline_mode<synchronous>, transform_indices = @transform_0, window_bounds = array<i64: 9, 32, 16>}, {pipeline_mode = #tpu.pipeline_mode<synchronous>, transform_indices = @transform_1, window_bounds = array<i64: 32, 1>}, {transform_indices = @transform_2, window_bounds = array<i64: 1, 16, 290>}, {transform_indices = @transform_3, window_bounds = array<i64: 1, 32, 256>}]} {
    %0 = tpu.iota {dimensions = array<i32: 1>} : vector<1x256xi32>
    %c16_i32 = arith.constant 16 : i32
    %c0_i32 = arith.constant 0 : i32
    %1 = arith.cmpi eq, %c16_i32, %c0_i32 : i32
    %c1_i32 = arith.constant 1 : i32
    %2 = arith.select %1, %c1_i32, %c16_i32 : i32
    %3 = vector.broadcast %2 : i32 to vector<1x256xi32>
    %4 = arith.remsi %0, %3 : vector<1x256xi32>
    %c0_i32_0 = arith.constant 0 : i32
    %5 = vector.broadcast %c0_i32_0 : i32 to vector<1x256xi32>
    %6 = arith.cmpi ne, %4, %5 : vector<1x256xi32>
    %c0_i32_1 = arith.constant 0 : i32
    %7 = vector.broadcast %c0_i32_1 : i32 to vector<1x256xi32>
    %8 = arith.cmpi slt, %4, %7 : vector<1x256xi32>
    %c0_i32_2 = arith.constant 0 : i32
    %9 = arith.cmpi slt, %2, %c0_i32_2 : i32
    %10 = vector.broadcast %9 : i1 to vector<1x256xi1>
    %11 = vector.broadcast %10 : vector<1x256xi1> to vector<1x256xi1>
    %12 = arith.xori %8, %11 : vector<1x256xi1>
    %13 = arith.andi %12, %6 : vector<1x256xi1>
    %14 = vector.broadcast %2 : i32 to vector<1x256xi32>
    %15 = arith.addi %4, %14 : vector<1x256xi32>
    %16 = arith.select %13, %15, %4 : vector<1x256xi1>, vector<1x256xi32>
    %c0_i32_3 = arith.constant 0 : i32
    %17 = vector.broadcast %c0_i32_3 : i32 to vector<1x256xi32>
    %18 = arith.cmpi ne, %16, %17 : vector<1x256xi32>
    %c15_i32 = arith.constant 15 : i32
    %19 = vector.broadcast %c15_i32 : i32 to vector<1x256xi32>
    %20 = arith.cmpi ne, %16, %19 : vector<1x256xi32>
    %c0 = arith.constant 0 : index
    %c0_4 = arith.constant 0 : index
    %c0_5 = arith.constant 0 : index
    %21 = vector.load %arg3[%c0, %c0_4, %c0_5] : memref<1x16x290xf32, #tpu.memory_space<vmem>>, vector<1x16x290xf32>
    %22 = vector.shape_cast %21 : vector<1x16x290xf32> to vector<16x290xf32>
    %cst = arith.constant 0.000000e+00 : f32
    %23 = vector.broadcast %cst : f32 to vector<32x256xf32>
    %24 = vector.extract_strided_slice %22 {offsets = [0, 0], sizes = [16, 256], strides = [1, 1]} : vector<16x290xf32> to vector<16x256xf32>
    %c0_i32_6 = arith.constant 0 : i32
    %25 = arith.sitofp %c0_i32_6 : i32 to f32
    %26 = vector.shape_cast %18 : vector<1x256xi1> to vector<1x256xi1>
    %27 = vector.broadcast %26 : vector<1x256xi1> to vector<16x256xi1>
    %28 = vector.broadcast %25 : f32 to vector<16x256xf32>
    %29 = arith.select %27, %24, %28 : vector<16x256xi1>, vector<16x256xf32>
    %c0_7 = arith.constant 0 : index
    %c0_8 = arith.constant 0 : index
    %c0_9 = arith.constant 0 : index
    %30 = vector.load %arg1[%c0_7, %c0_8, %c0_9] : memref<9x32x16xf32, #tpu.memory_space<vmem>>, vector<1x32x16xf32>
    %31 = vector.shape_cast %30 : vector<1x32x16xf32> to vector<32x16xf32>
    %cst_10 = arith.constant dense<0.000000e+00> : vector<32x256xf32>
    %32 = tpu.matmul %31, %29, %cst_10 {dimension_numbers = #tpu.dot_dimension_numbers<[1], [0], [0], [1], [0, 0, 1, 1], [], []>} : vector<32x16xf32>, vector<16x256xf32>, vector<32x256xf32> -> vector<32x256xf32>
    %33 = arith.addf %23, %32 : vector<32x256xf32>
    %34 = vector.extract_strided_slice %22 {offsets = [0, 1], sizes = [16, 256], strides = [1, 1]} : vector<16x290xf32> to vector<16x256xf32>
    %c1 = arith.constant 1 : index
    %c0_11 = arith.constant 0 : index
    %c0_12 = arith.constant 0 : index
    %35 = vector.load %arg1[%c1, %c0_11, %c0_12] : memref<9x32x16xf32, #tpu.memory_space<vmem>>, vector<1x32x16xf32>
    %36 = vector.shape_cast %35 : vector<1x32x16xf32> to vector<32x16xf32>
    %cst_13 = arith.constant dense<0.000000e+00> : vector<32x256xf32>
    %37 = tpu.matmul %36, %34, %cst_13 {dimension_numbers = #tpu.dot_dimension_numbers<[1], [0], [0], [1], [0, 0, 1, 1], [], []>} : vector<32x16xf32>, vector<16x256xf32>, vector<32x256xf32> -> vector<32x256xf32>
    %38 = arith.addf %33, %37 : vector<32x256xf32>
    %39 = vector.extract_strided_slice %22 {offsets = [0, 2], sizes = [16, 256], strides = [1, 1]} : vector<16x290xf32> to vector<16x256xf32>
    %c0_i32_14 = arith.constant 0 : i32
    %40 = arith.sitofp %c0_i32_14 : i32 to f32
    %41 = vector.shape_cast %20 : vector<1x256xi1> to vector<1x256xi1>
    %42 = vector.broadcast %41 : vector<1x256xi1> to vector<16x256xi1>
    %43 = vector.broadcast %40 : f32 to vector<16x256xf32>
    %44 = arith.select %42, %39, %43 : vector<16x256xi1>, vector<16x256xf32>
    %c2 = arith.constant 2 : index
    %c0_15 = arith.constant 0 : index
    %c0_16 = arith.constant 0 : index
    %45 = vector.load %arg1[%c2, %c0_15, %c0_16] : memref<9x32x16xf32, #tpu.memory_space<vmem>>, vector<1x32x16xf32>
    %46 = vector.shape_cast %45 : vector<1x32x16xf32> to vector<32x16xf32>
    %cst_17 = arith.constant dense<0.000000e+00> : vector<32x256xf32>
    %47 = tpu.matmul %46, %44, %cst_17 {dimension_numbers = #tpu.dot_dimension_numbers<[1], [0], [0], [1], [0, 0, 1, 1], [], []>} : vector<32x16xf32>, vector<16x256xf32>, vector<32x256xf32> -> vector<32x256xf32>
    %48 = arith.addf %38, %47 : vector<32x256xf32>
    %49 = vector.extract_strided_slice %22 {offsets = [0, 16], sizes = [16, 256], strides = [1, 1]} : vector<16x290xf32> to vector<16x256xf32>
    %c0_i32_18 = arith.constant 0 : i32
    %50 = arith.sitofp %c0_i32_18 : i32 to f32
    %51 = vector.shape_cast %18 : vector<1x256xi1> to vector<1x256xi1>
    %52 = vector.broadcast %51 : vector<1x256xi1> to vector<16x256xi1>
    %53 = vector.broadcast %50 : f32 to vector<16x256xf32>
    %54 = arith.select %52, %49, %53 : vector<16x256xi1>, vector<16x256xf32>
    %c3 = arith.constant 3 : index
    %c0_19 = arith.constant 0 : index
    %c0_20 = arith.constant 0 : index
    %55 = vector.load %arg1[%c3, %c0_19, %c0_20] : memref<9x32x16xf32, #tpu.memory_space<vmem>>, vector<1x32x16xf32>
    %56 = vector.shape_cast %55 : vector<1x32x16xf32> to vector<32x16xf32>
    %cst_21 = arith.constant dense<0.000000e+00> : vector<32x256xf32>
    %57 = tpu.matmul %56, %54, %cst_21 {dimension_numbers = #tpu.dot_dimension_numbers<[1], [0], [0], [1], [0, 0, 1, 1], [], []>} : vector<32x16xf32>, vector<16x256xf32>, vector<32x256xf32> -> vector<32x256xf32>
    %58 = arith.addf %48, %57 : vector<32x256xf32>
    %59 = vector.extract_strided_slice %22 {offsets = [0, 17], sizes = [16, 256], strides = [1, 1]} : vector<16x290xf32> to vector<16x256xf32>
    %c4 = arith.constant 4 : index
    %c0_22 = arith.constant 0 : index
    %c0_23 = arith.constant 0 : index
    %60 = vector.load %arg1[%c4, %c0_22, %c0_23] : memref<9x32x16xf32, #tpu.memory_space<vmem>>, vector<1x32x16xf32>
    %61 = vector.shape_cast %60 : vector<1x32x16xf32> to vector<32x16xf32>
    %cst_24 = arith.constant dense<0.000000e+00> : vector<32x256xf32>
    %62 = tpu.matmul %61, %59, %cst_24 {dimension_numbers = #tpu.dot_dimension_numbers<[1], [0], [0], [1], [0, 0, 1, 1], [], []>} : vector<32x16xf32>, vector<16x256xf32>, vector<32x256xf32> -> vector<32x256xf32>
    %63 = arith.addf %58, %62 : vector<32x256xf32>
    %64 = vector.extract_strided_slice %22 {offsets = [0, 18], sizes = [16, 256], strides = [1, 1]} : vector<16x290xf32> to vector<16x256xf32>
    %c0_i32_25 = arith.constant 0 : i32
    %65 = arith.sitofp %c0_i32_25 : i32 to f32
    %66 = vector.shape_cast %20 : vector<1x256xi1> to vector<1x256xi1>
    %67 = vector.broadcast %66 : vector<1x256xi1> to vector<16x256xi1>
    %68 = vector.broadcast %65 : f32 to vector<16x256xf32>
    %69 = arith.select %67, %64, %68 : vector<16x256xi1>, vector<16x256xf32>
    %c5 = arith.constant 5 : index
    %c0_26 = arith.constant 0 : index
    %c0_27 = arith.constant 0 : index
    %70 = vector.load %arg1[%c5, %c0_26, %c0_27] : memref<9x32x16xf32, #tpu.memory_space<vmem>>, vector<1x32x16xf32>
    %71 = vector.shape_cast %70 : vector<1x32x16xf32> to vector<32x16xf32>
    %cst_28 = arith.constant dense<0.000000e+00> : vector<32x256xf32>
    %72 = tpu.matmul %71, %69, %cst_28 {dimension_numbers = #tpu.dot_dimension_numbers<[1], [0], [0], [1], [0, 0, 1, 1], [], []>} : vector<32x16xf32>, vector<16x256xf32>, vector<32x256xf32> -> vector<32x256xf32>
    %73 = arith.addf %63, %72 : vector<32x256xf32>
    %74 = vector.extract_strided_slice %22 {offsets = [0, 32], sizes = [16, 256], strides = [1, 1]} : vector<16x290xf32> to vector<16x256xf32>
    %c0_i32_29 = arith.constant 0 : i32
    %75 = arith.sitofp %c0_i32_29 : i32 to f32
    %76 = vector.shape_cast %18 : vector<1x256xi1> to vector<1x256xi1>
    %77 = vector.broadcast %76 : vector<1x256xi1> to vector<16x256xi1>
    %78 = vector.broadcast %75 : f32 to vector<16x256xf32>
    %79 = arith.select %77, %74, %78 : vector<16x256xi1>, vector<16x256xf32>
    %c6 = arith.constant 6 : index
    %c0_30 = arith.constant 0 : index
    %c0_31 = arith.constant 0 : index
    %80 = vector.load %arg1[%c6, %c0_30, %c0_31] : memref<9x32x16xf32, #tpu.memory_space<vmem>>, vector<1x32x16xf32>
    %81 = vector.shape_cast %80 : vector<1x32x16xf32> to vector<32x16xf32>
    %cst_32 = arith.constant dense<0.000000e+00> : vector<32x256xf32>
    %82 = tpu.matmul %81, %79, %cst_32 {dimension_numbers = #tpu.dot_dimension_numbers<[1], [0], [0], [1], [0, 0, 1, 1], [], []>} : vector<32x16xf32>, vector<16x256xf32>, vector<32x256xf32> -> vector<32x256xf32>
    %83 = arith.addf %73, %82 : vector<32x256xf32>
    %84 = vector.extract_strided_slice %22 {offsets = [0, 33], sizes = [16, 256], strides = [1, 1]} : vector<16x290xf32> to vector<16x256xf32>
    %c7 = arith.constant 7 : index
    %c0_33 = arith.constant 0 : index
    %c0_34 = arith.constant 0 : index
    %85 = vector.load %arg1[%c7, %c0_33, %c0_34] : memref<9x32x16xf32, #tpu.memory_space<vmem>>, vector<1x32x16xf32>
    %86 = vector.shape_cast %85 : vector<1x32x16xf32> to vector<32x16xf32>
    %cst_35 = arith.constant dense<0.000000e+00> : vector<32x256xf32>
    %87 = tpu.matmul %86, %84, %cst_35 {dimension_numbers = #tpu.dot_dimension_numbers<[1], [0], [0], [1], [0, 0, 1, 1], [], []>} : vector<32x16xf32>, vector<16x256xf32>, vector<32x256xf32> -> vector<32x256xf32>
    %88 = arith.addf %83, %87 : vector<32x256xf32>
    %89 = vector.extract_strided_slice %22 {offsets = [0, 34], sizes = [16, 256], strides = [1, 1]} : vector<16x290xf32> to vector<16x256xf32>
    %c0_i32_36 = arith.constant 0 : i32
    %90 = arith.sitofp %c0_i32_36 : i32 to f32
    %91 = vector.shape_cast %20 : vector<1x256xi1> to vector<1x256xi1>
    %92 = vector.broadcast %91 : vector<1x256xi1> to vector<16x256xi1>
    %93 = vector.broadcast %90 : f32 to vector<16x256xf32>
    %94 = arith.select %92, %89, %93 : vector<16x256xi1>, vector<16x256xf32>
    %c8 = arith.constant 8 : index
    %c0_37 = arith.constant 0 : index
    %c0_38 = arith.constant 0 : index
    %95 = vector.load %arg1[%c8, %c0_37, %c0_38] : memref<9x32x16xf32, #tpu.memory_space<vmem>>, vector<1x32x16xf32>
    %96 = vector.shape_cast %95 : vector<1x32x16xf32> to vector<32x16xf32>
    %cst_39 = arith.constant dense<0.000000e+00> : vector<32x256xf32>
    %97 = tpu.matmul %96, %94, %cst_39 {dimension_numbers = #tpu.dot_dimension_numbers<[1], [0], [0], [1], [0, 0, 1, 1], [], []>} : vector<32x16xf32>, vector<16x256xf32>, vector<32x256xf32> -> vector<32x256xf32>
    %98 = arith.addf %88, %97 : vector<32x256xf32>
    %c0_40 = arith.constant 0 : index
    %c0_41 = arith.constant 0 : index
    %99 = vector.load %arg2[%c0_40, %c0_41] : memref<32x1xf32, #tpu.memory_space<vmem>>, vector<32x1xf32>
    %100 = vector.broadcast %99 : vector<32x1xf32> to vector<32x256xf32>
    %101 = arith.addf %98, %100 : vector<32x256xf32>
    %c0_42 = arith.constant 0 : index
    %c0_43 = arith.constant 0 : index
    %c0_44 = arith.constant 0 : index
    %102 = vector.load %arg4[%c0_42, %c0_43, %c0_44] : memref<1x32x256xf32, #tpu.memory_space<vmem>>, vector<1x32x256xf32>
    %103 = vector.shape_cast %102 : vector<1x32x256xf32> to vector<32x256xf32>
    %104 = vector.shape_cast %101 : vector<32x256xf32> to vector<1x32x256xf32>
    tpu.vector_store %arg4[%c0_42, %c0_43, %c0_44], %104 {strides = array<i32>} : memref<1x32x256xf32, #tpu.memory_space<vmem>>, vector<1x32x256xf32>,
    return
  }
  func.func @transform_0(%arg0: i32) -> (i32, i32, i32) {
    %c0_i32 = arith.constant 0 : i32
    %c0_i32_0 = arith.constant 0 : i32
    %c0_i32_1 = arith.constant 0 : i32
    %c0_i32_2 = arith.constant 0 : i32
    return %c0_i32, %c0_i32_0, %c0_i32_1 : i32, i32, i32
  }
  func.func @transform_1(%arg0: i32) -> (i32, i32) {
    %c0_i32 = arith.constant 0 : i32
    %c0_i32_0 = arith.constant 0 : i32
    %c0_i32_1 = arith.constant 0 : i32
    return %c0_i32, %c0_i32_0 : i32, i32
  }
  func.func @transform_2(%arg0: i32) -> (i32, i32, i32) {
    %c0_i32 = arith.constant 0 : i32
    %c0_i32_0 = arith.constant 0 : i32
    %c0_i32_1 = arith.constant 0 : i32
    return %arg0, %c0_i32, %c0_i32_0 : i32, i32, i32
  }
  func.func @transform_3(%arg0: i32) -> (i32, i32, i32) {
    %c0_i32 = arith.constant 0 : i32
    %c0_i32_0 = arith.constant 0 : i32
    %c0_i32_1 = arith.constant 0 : i32
    return %arg0, %c0_i32, %c0_i32_0 : i32, i32, i32
  }
}

</mosaic_0001>

<bundles_post_ra>
// kernel: dconv_transpose2d.1
= control target key start
LH: loop header
LB: loop body
LE: loop exit
PB: predicated region body
PF: predicated region fallthrough
CT: control target
= control target key end

     0   :  { %s1685_s12 = smov 0   ;;  %s2095_s0 = inlined_call_operand.vmem [shape: f32[9,32,16], index: 0, kind: input, shape index: {}]   ;;  %s2096_s1 = inlined_call_operand.vmem [shape: f32[32,1], index: 1, kind: input, shape index: {}]   ;;  %s2097_s2 = inlined_call_operand.vmem [shape: f32[2,16,290], index: 2, kind: input, shape index: {}]   ;;  %s2098_s3 = inlined_call_operand.vmem [shape: f32[2,32,256], index: 3, kind: output, shape index: {}]  }
   0x1 LB: > { %s1519_s13 = sadd.s32 4294967295, %s1653_s12   ;;  %p1523_p0 = scmp.ge.s32.totalorder %s1653_s12, 1  ;;  %s1653_s12 = sphi %s1685_s12, %s13_s12  }
   0x2   : > { %p137_p1 = scmp.lt.s32.totalorder %s1653_s12, 3 }
   0x4   : > { %p138_p2 = pnand %p1523_p0, %p137_p1 }
   0x6   : > { %141 = sbr.rel (%p138_p2) target bundleno = 440 (0x1b8), region = 32 }
   0xb   : > { %p161_p3 = scmp.lt.s32.totalorder %s1519_s13, 1  ;;  %s1655_s18 = smov 127   ;;  %v1656_v4 = vmov 0.0   ;;  %v1424_v7 = vld [vmem:[%s2096_s1] sm:$0xff]  ;;  %v1425_v8 = vld [vmem:[%s2096_s1 + $0x8] sm:$0xff]  ;;  %v1664_v9 = vmov 0   ;;  %v171_v12 = vlaneseq }
   0xc   : > { %329 = vmatprep.mubr.f32.mxu0 %v1656_v4  ;;  %341 = vmatprep.mubr.f32.mxu1 %v1656_v4  ;;  %s1657_s19 = smov 126   ;;  %s1658_s20 = smov 112   ;;  %v1426_v10 = vld [vmem:[%s2096_s1 + $0x10] sm:$0xff]  ;;  %v1427_v11 = vld [vmem:[%s2096_s1 + $0x18] sm:$0xff]  ;;  %vm243_vm0 = vcmask 1039360   ;;  %v1527_v26 = vld [vmem:[%s2095_s0 + $0x20] sm:$0xff] }
   0xd   : > { %s2112_s13 = smov (!%p161_p3, %s1519_s13), 1  ;;  %s1659_s21 = smov 111   ;;  %1645 = vset.pattern.permute.xlu0 %v1664_v9  ;;  %1646 = vset.pattern.permute.xlu1 %v1664_v9  ;;  %v172_v13 = vand.u32 127, %v171_v12  ;;  %vm252_vm1 = vcmask 130048   ;;  %v1529_v27 = vld [vmem:[%s2095_s0 + $0x30] sm:$0xff]  ;;  %vm471_vm2 = vcmask 1031168  }
   0xe   : > { %s1626_s14 = smul.u32 48, %s2112_s13  ;;  %s1660_s22 = smov 110   ;;  %v1530_v35 = vld [vmem:[%s2095_s0 + $0x38] sm:$0xff]  ;;  %v1528_v36 = vld [vmem:[%s2095_s0 + $0x28] sm:$0xff]  ;;  %v216_v41 = vld [vmem:[%s2095_s0] sm:$0xff]  ;;  %vm610_vm7 = vcmask 916480  }
   0xf   : > { %s1661_s23 = smov 96   ;;  %s1662_s24 = smov 95   ;;  %v173_v16 = vadd.s32 128, %v172_v13  ;;  %v178_v28 = vand.u32 15, %v172_v13  ;;  %v217_v46 = vld [vmem:[%s2095_s0 + $0x8] sm:$0xff]  ;;  %v1543_v47 = vld [vmem:[%s2095_s0 + $0x40] sm:$0xff] }
  0x10   : > { %s165_s17 = scalar_lea.vmem %s2097_s2, %s1626_s14  ;;  %s1663_s25 = smov 94   ;;  %v218_v51 = vld [vmem:[%s2095_s0 + $0x10] sm:$0xff]  ;;  %v1544_v52 = vld [vmem:[%s2095_s0 + $0x48] sm:$0xff]  ;;  %v219_v56 = vld [vmem:[%s2095_s0 + $0x18] sm:$0xff]  ;;  %vm754_vm8 = vcmask 908288   ;;  %vm884_vm9 = vcmask 900096  }
  0x11   : > { %v1699_v0 = vld [vmem:[%s165_s17 + $0x20] sm:$0xff]  ;;  %v1701_v1 = vld [vmem:[%s165_s17 + $0x18] sm:$0xff]  ;;  %v207_v2 = vld [vmem:[%s165_s17 + $0x28] sm:$0xff]  ;;  %v185_v21 = vand.u32 15, %v173_v16  ;;  %vm1767_vm5 = vcmp.ne.s32.totalorder %v178_v28, 0  ;;  %vm1789_vm6 = vcmp.ne.s32.totalorder %v178_v28, 15 }
  0x12   : > { %239 = vrot.lane.b32.xlu0 %v1699_v0, %s1655_s18  ;;  %237 = vrot.lane.b32.xlu1 %v1701_v1, %s1655_s18  ;;  %v1705_v3 = vld [vmem:[%s165_s17 + $0x8] sm:$0xff]  ;;  %v204_v5 = vld [vmem:[%s165_s17 + $0x10] sm:$0xff]  ;;  %vm1023_vm10 = vcmask 785408   ;;  %vm1167_vm11 = vcmask 777216   ;;  %vm1297_vm12 = vcmask 769024   ;;  %s1621_s4 = sshll.u32 %s2112_s13, 6 }
  0x13   : > { %v1710_v6 = vld [vmem:[%s165_s17] sm:$0xff]  ;;  %vm1759_vm3 = vcmp.ne.s32.totalorder %v185_v21, 0  ;;  %vm1763_vm4 = vcmp.ne.s32.totalorder %v185_v21, 15  ;;  %v1545_v57 = vld [vmem:[%s2095_s0 + $0x50] sm:$0xff]  ;;  %v1546_v61 = vld [vmem:[%s2095_s0 + $0x58] sm:$0xff]  ;;  %s2073_s6 = scalar_lea.vmem %s2098_s3, %s1621_s4 }
  0x14   : > { %v1567_v13 = vld [vmem:[%s2095_s0 + $0x80] sm:$0xff]  ;;  %v1558_v16 = vld [vmem:[%s2095_s0 + $0x78] sm:$0xff]  ;;  %v1588_v29 = vld [vmem:[%s2095_s0 + $0xc8] sm:$0xff] }
  0x15   : > { %v1608_v30 = vld [vmem:[%s2095_s0 + $0x108] sm:$0xff]  ;;  %v1609_v37 = vld [vmem:[%s2095_s0 + $0x110] sm:$0xff] }
  0x16   : > { %241 = vrot.lane.b32.xlu0 %v207_v2, %s1655_s18  ;;  %233 = vrot.lane.b32.xlu1 %v1705_v3, %s1655_s18 }
  0x1a   : > { %235 = vrot.lane.b32.xlu0 %v204_v5, %s1655_s18  ;;  %231 = vrot.lane.b32.xlu1 %v1710_v6, %s1655_s18 }
  0x1e   : > { %467 = vrot.lane.b32.xlu0 %v1699_v0, %s1657_s19  ;;  %469 = vrot.lane.b32.xlu1 %v207_v2, %s1657_s19 }
  0x22   : > { %465 = vrot.lane.b32.xlu0 %v1701_v1, %s1657_s19  ;;  %461 = vrot.lane.b32.xlu1 %v1705_v3, %s1657_s19 }
  0x26   : > { %463 = vrot.lane.b32.xlu0 %v204_v5, %s1657_s19  ;;  %459 = vrot.lane.b32.xlu1 %v1710_v6, %s1657_s19 }
  0x2a   : > { %606 = vrot.lane.b32.xlu0 %v1699_v0, %s1658_s20  ;;  %608 = vrot.lane.b32.xlu1 %v207_v2, %s1658_s20 }
  0x2e   : > { %604 = vrot.lane.b32.xlu0 %v1701_v1, %s1658_s20  ;;  %600 = vrot.lane.b32.xlu1 %v1705_v3, %s1658_s20 }
  0x32   : > { %602 = vrot.lane.b32.xlu0 %v204_v5, %s1658_s20  ;;  %750 = vrot.lane.b32.xlu1 %v1699_v0, %s1659_s21 }
  0x36   : > { %752 = vrot.lane.b32.xlu0 %v207_v2, %s1659_s21  ;;  %598 = vrot.lane.b32.xlu1 %v1710_v6, %s1658_s20 }
  0x3a   : > { %748 = vrot.lane.b32.xlu0 %v1701_v1, %s1659_s21  ;;  %744 = vrot.lane.b32.xlu1 %v1705_v3, %s1659_s21 }
  0x3e   : > { %746 = vrot.lane.b32.xlu0 %v204_v5, %s1659_s21  ;;  %742 = vrot.lane.b32.xlu1 %v1710_v6, %s1659_s21 }
  0x42   : > { %880 = vrot.lane.b32.xlu0 %v1699_v0, %s1660_s22  ;;  %882 = vrot.lane.b32.xlu1 %v207_v2, %s1660_s22 }
  0x46   : > { %878 = vrot.lane.b32.xlu0 %v1701_v1, %s1660_s22  ;;  %874 = vrot.lane.b32.xlu1 %v1705_v3, %s1660_s22 }
  0x4a   : > { %876 = vrot.lane.b32.xlu0 %v204_v5, %s1660_s22  ;;  %1019 = vrot.lane.b32.xlu1 %v1699_v0, %s1661_s23 }
  0x4e   : > { %1021 = vrot.lane.b32.xlu0 %v207_v2, %s1661_s23  ;;  %872 = vrot.lane.b32.xlu1 %v1710_v6, %s1660_s22 }
  0x52   : > { %1017 = vrot.lane.b32.xlu0 %v1701_v1, %s1661_s23  ;;  %1013 = vrot.lane.b32.xlu1 %v1705_v3, %s1661_s23 }
  0x56   : > { %1015 = vrot.lane.b32.xlu0 %v204_v5, %s1661_s23  ;;  %1011 = vrot.lane.b32.xlu1 %v1710_v6, %s1661_s23 }
  0x5a   : > { %1163 = vrot.lane.b32.xlu0 %v1699_v0, %s1662_s24  ;;  %1165 = vrot.lane.b32.xlu1 %v207_v2, %s1662_s24 }
  0x5e   : > { %1161 = vrot.lane.b32.xlu0 %v1701_v1, %s1662_s24  ;;  %1157 = vrot.lane.b32.xlu1 %v1705_v3, %s1662_s24 }
  0x62   : > { %1159 = vrot.lane.b32.xlu0 %v204_v5, %s1662_s24  ;;  %1293 = vrot.lane.b32.xlu1 %v1699_v0, %s1663_s25 }
  0x66   : > { %1295 = vrot.lane.b32.xlu0 %v207_v2, %s1663_s25  ;;  %1155 = vrot.lane.b32.xlu1 %v1710_v6, %s1662_s24 }
  0x6a   : > { %1291 = vrot.lane.b32.xlu0 %v1701_v1, %s1663_s25  ;;  %1287 = vrot.lane.b32.xlu1 %v1705_v3, %s1663_s25 }
  0x6e   : > { %1289 = vrot.lane.b32.xlu0 %v204_v5, %s1663_s25  ;;  %1285 = vrot.lane.b32.xlu1 %v1710_v6, %s1663_s25 }
  0x72   : > { %1430 = vperm.xlu0 %1645, %v1424_v7   ;;  %1435 = vperm.xlu1 %1646, %v1425_v8  }
  0x76   : > { %1440 = vperm.xlu1 %1646, %v1426_v10   ;;  %1445 = vperm.xlu0 %1645, %v1427_v11   ;;  %v1557_v10 = vld [vmem:[%s2095_s0 + $0x70] sm:$0xff] }
  0x84   : > { %v240_v14 = vpop.permute.xlu0 %239  ;;  %v238_v15 = vpop.permute.xlu1 %237 }
  0x85   : > { %v246_v20 = vsel %vm243_vm0, %v238_v15, %v240_v14 }
  0x88   : > { %v242_v17 = vpop.permute.xlu0 %241  ;;  %v234_v18 = vpop.permute.xlu1 %233 }
  0x89   : > { %v247_v19 = vsel %vm243_vm0, %v240_v14, %v242_v17 }
  0x8a   : > { %293 = vmatprep.subr.mxu0 %v247_v19  ;;  %1622 = vmatprep.subr.mxu1 %v247_v19 }
  0x8b   : > { %294 = vmatpush1.msra.mxu0 %v246_v20  ;;  %1624 = vmatpush1.msra.mxu1 %v246_v20 }
  0x8c   : > { %v236_v22 = vpop.permute.xlu0 %235  ;;  %v232_v23 = vpop.permute.xlu1 %231 }
  0x8d   : > { %v245_v24 = vsel %vm243_vm0, %v234_v18, %v236_v22  ;;  %v244_v25 = vsel %vm243_vm0, %v232_v23, %v234_v18  ;;  %v1568_v18 = vld [vmem:[%s2095_s0 + $0x88] sm:$0xff]  ;;  %v1569_v22 = vld [vmem:[%s2095_s0 + $0x90] sm:$0xff] }
  0x8e   : > { %295 = vmatprep.subr.mxu0 %v245_v24  ;;  %1623 = vmatprep.subr.mxu1 %v245_v24 }
  0x8f   : > { %296 = vmatpush1.msra.mxu0 %v244_v25  ;;  %1625 = vmatpush1.msra.mxu1 %v244_v25 }
  0x90   : > { %v468_v32 = vpop.permute.xlu0 %467  ;;  %v470_v33 = vpop.permute.xlu1 %469  ;;  %1531 = vmatmul.mubr.msk.f32.vlgmr.msra.gmra.mxu0 %vm252_vm1, %v1527_v26  ;;  %1533 = vmatmul.mubr.msk.f32.vlgmr.msra.gmra.mxu1 %vm252_vm1, %v1529_v27  ;;  %v1570_v26 = vld [vmem:[%s2095_s0 + $0x98] sm:$0xff] }
  0x91   : > { %v475_v34 = vsel %vm471_vm2, %v468_v32, %v470_v33  ;;  %347 = vmatprep.mubr.f32.mxu1 %v1656_v4  ;;  %1535 = vmatprep.subr.msk.mxu1 %vm1759_vm3, %v1699_v0  ;;  %v1555_v0 = vld [vmem:[%s2095_s0 + $0x60] sm:$0xff] }
  0x92   : > { %1547 = vmatprep.subr.msk.mxu0 %vm1763_vm4, %v475_v34  ;;  %1536 = vmatpush1.msk.msra.mxu1 %vm1767_vm5, %v1701_v1 }
  0x93   : > { %1537 = vmatprep.subr.msk.mxu1 %vm1759_vm3, %v1705_v3  ;;  %335 = vmatprep.mubr.f32.mxu0 %v1656_v4 }
  0x94   : > { %v466_v38 = vpop.permute.xlu0 %465  ;;  %v462_v39 = vpop.permute.xlu1 %461  ;;  %1534 = vmatmul.mubr.msk.f32.gmra.mxu1 %vm252_vm1, %v1530_v35  ;;  %1532 = vmatmul.mubr.msk.f32.gmra.mxu0 %vm252_vm1, %v1528_v36 }
  0x95   : > { %v474_v40 = vsel %vm471_vm2, %v466_v38, %v468_v32  ;;  %1538 = vmatpush1.msk.msra.mxu1 %vm1767_vm5, %v1710_v6  ;;  %430 = vmatprep.mubr.f32.mxu1 %v1656_v4  ;;  %v1556_v6 = vld [vmem:[%s2095_s0 + $0x68] sm:$0xff]  ;;  %v1575_v32 = vld [vmem:[%s2095_s0 + $0xa0] sm:$0xff] }
  0x96   : > { %1548 = vmatpush1.msk.msra.mxu0 %vm1789_vm6, %v474_v40  ;;  %565 = vmatprep.mubr.f32.mxu0 %v1656_v4  ;;  %v1576_v38 = vld [vmem:[%s2095_s0 + $0xa8] sm:$0xff] }
  0x98   : > { %v464_v42 = vpop.permute.xlu0 %463  ;;  %v460_v43 = vpop.permute.xlu1 %459  ;;  %1539 = vmatmul.mubr.msk.f32.vlgmr.msra.gmra.mxu1 %vm252_vm1, %v216_v41 }
  0x99   : > { %v473_v44 = vsel %vm471_vm2, %v462_v39, %v464_v42  ;;  %v472_v45 = vsel %vm471_vm2, %v460_v43, %v462_v39  ;;  %436 = vmatprep.mubr.f32.mxu1 %v1656_v4  ;;  %v1577_v42 = vld [vmem:[%s2095_s0 + $0xb0] sm:$0xff] }
  0x9a   : > { %1549 = vmatprep.subr.msk.mxu0 %vm1763_vm4, %v473_v44 }
  0x9b   : > { %1550 = vmatpush1.msk.msra.mxu0 %vm1789_vm6, %v472_v45  ;;  %v1587_v45 = vld [vmem:[%s2095_s0 + $0xc0] sm:$0xff] }
  0x9c   : > { %v607_v48 = vpop.permute.xlu0 %606  ;;  %v609_v49 = vpop.permute.xlu1 %608  ;;  %1540 = vmatmul.mubr.msk.f32.gmra.mxu1 %vm252_vm1, %v217_v46  ;;  %1551 = vmatmul.mubr.msk.f32.vlgmr.msra.gmra.mxu0 %vm252_vm1, %v1543_v47 }
  0x9d   : > { %v614_v50 = vsel %vm610_vm7, %v607_v48, %v609_v49  ;;  %442 = vmatprep.mubr.f32.mxu1 %v1656_v4  ;;  %571 = vmatprep.mubr.f32.mxu0 %v1656_v4 }
  0x9e   : > { %1559 = vmatprep.subr.msk.mxu1 %vm1759_vm3, %v614_v50 }
  0xa0   : > { %v605_v53 = vpop.permute.xlu0 %604  ;;  %v601_v54 = vpop.permute.xlu1 %600  ;;  %1541 = vmatmul.mubr.msk.f32.gmra.mxu1 %vm252_vm1, %v218_v51  ;;  %1552 = vmatmul.mubr.msk.f32.gmra.mxu0 %vm252_vm1, %v1544_v52  ;;  %v1589_v52 = vld [vmem:[%s2095_s0 + $0xd0] sm:$0xff] }
  0xa1   : > { %v613_v55 = vsel %vm610_vm7, %v605_v53, %v607_v48  ;;  %448 = vmatprep.mubr.f32.mxu1 %v1656_v4  ;;  %577 = vmatprep.mubr.f32.mxu0 %v1656_v4  ;;  %v1578_v48 = vld [vmem:[%s2095_s0 + $0xb8] sm:$0xff] }
  0xa2   : > { %1560 = vmatpush1.msk.msra.mxu1 %vm1767_vm5, %v613_v55 }
  0xa4   : > { %v603_v58 = vpop.permute.xlu0 %602  ;;  %v751_v59 = vpop.permute.xlu1 %750  ;;  %1542 = vmatmul.mubr.msk.f32.gmra.mxu1 %vm252_vm1, %v219_v56  ;;  %1553 = vmatmul.mubr.msk.f32.gmra.mxu0 %vm252_vm1, %v1545_v57  ;;  %v1590_v56 = vld [vmem:[%s2095_s0 + $0xd8] sm:$0xff] }
  0xa5   : > { %v612_v60 = vsel %vm610_vm7, %v601_v54, %v603_v58  ;;  %704 = vmatprep.mubr.f32.mxu1 %v1656_v4  ;;  %583 = vmatprep.mubr.f32.mxu0 %v1656_v4 }
  0xa6   : > { %1561 = vmatprep.subr.msk.mxu1 %vm1759_vm3, %v612_v60 }
  0xa8   : > { %v753_v62 = vpop.permute.xlu0 %752  ;;  %v599_v63 = vpop.permute.xlu1 %598  ;;  %1554 = vmatmul.mubr.msk.f32.gmra.mxu0 %vm252_vm1, %v1546_v61 }
  0xa9   : > { %v611_v1 = vsel %vm610_vm7, %v599_v63, %v601_v54  ;;  %v758_v2 = vsel %vm754_vm8, %v751_v59, %v753_v62  ;;  %839 = vmatprep.mubr.f32.mxu0 %v1656_v4 }
  0xaa   : > { %1562 = vmatpush1.msk.msra.mxu1 %vm1767_vm5, %v611_v1  ;;  %803 = vmatprep.subr.mxu0 %v758_v2 }
  0xab   : > { %1563 = vmatmul.mubr.msk.f32.vlgmr.msra.gmra.mxu1 %vm252_vm1, %v1555_v0  ;;  %v1600_v0 = vld [vmem:[%s2095_s0 + $0xe8] sm:$0xff] }
  0xac   : > { %v749_v3 = vpop.permute.xlu0 %748  ;;  %v745_v5 = vpop.permute.xlu1 %744  ;;  %710 = vmatprep.mubr.f32.mxu1 %v1656_v4 }
  0xad   : > { %v757_v7 = vsel %vm754_vm8, %v749_v3, %v751_v59  ;;  %v1599_v59 = vld [vmem:[%s2095_s0 + $0xe0] sm:$0xff] }
  0xae   : > { %804 = vmatpush1.msra.mxu0 %v757_v7 }
  0xaf   : > { %1564 = vmatmul.mubr.msk.f32.gmra.mxu1 %vm252_vm1, %v1556_v6 }
  0xb0   : > { %v747_v8 = vpop.permute.xlu0 %746  ;;  %v743_v9 = vpop.permute.xlu1 %742  ;;  %716 = vmatprep.mubr.f32.mxu1 %v1656_v4 }
  0xb1   : > { %v755_v11 = vsel %vm754_vm8, %v743_v9, %v745_v5  ;;  %v756_v12 = vsel %vm754_vm8, %v745_v5, %v747_v8  ;;  %v1601_v5 = vld [vmem:[%s2095_s0 + $0xf0] sm:$0xff]  ;;  %v1607_v8 = vld [vmem:[%s2095_s0 + $0x100] sm:$0xff]  ;;  %v1602_v9 = vld [vmem:[%s2095_s0 + $0xf8] sm:$0xff] }
  0xb2   : > { %805 = vmatprep.subr.mxu0 %v756_v12 }
  0xb3   : > { %806 = vmatpush1.msra.mxu0 %v755_v11  ;;  %1565 = vmatmul.mubr.msk.f32.gmra.mxu1 %vm252_vm1, %v1557_v10  ;;  %v1610_v10 = vld [vmem:[%s2095_s0 + $0x118] sm:$0xff] }
  0xb4   : > { %v881_v14 = vpop.permute.xlu0 %880  ;;  %1571 = vmatmul.mubr.msk.f32.vlgmr.msra.gmra.mxu0 %vm252_vm1, %v1567_v13  ;;  %v883_v15 = vpop.permute.xlu1 %882  ;;  %722 = vmatprep.mubr.f32.mxu1 %v1656_v4 }
  0xb5   : > { %v888_v17 = vsel %vm884_vm9, %v881_v14, %v883_v15  ;;  %845 = vmatprep.mubr.f32.mxu0 %v1656_v4 }
  0xb6   : > { %1579 = vmatprep.subr.msk.mxu1 %vm1763_vm4, %v888_v17 }
  0xb7   : > { %1566 = vmatmul.mubr.msk.f32.gmra.mxu1 %vm252_vm1, %v1558_v16 }
  0xb8   : > { %v879_v19 = vpop.permute.xlu0 %878  ;;  %1572 = vmatmul.mubr.msk.f32.gmra.mxu0 %vm252_vm1, %v1568_v18  ;;  %v875_v20 = vpop.permute.xlu1 %874  ;;  %978 = vmatprep.mubr.f32.mxu1 %v1656_v4 }
  0xb9   : > { %v887_v21 = vsel %vm884_vm9, %v879_v19, %v881_v14  ;;  %851 = vmatprep.mubr.f32.mxu0 %v1656_v4 }
  0xba   : > { %1580 = vmatpush1.msk.msra.mxu1 %vm1789_vm6, %v887_v21 }
  0xbc   : > { %v877_v23 = vpop.permute.xlu0 %876  ;;  %1573 = vmatmul.mubr.msk.f32.gmra.mxu0 %vm252_vm1, %v1569_v22  ;;  %v1020_v24 = vpop.permute.xlu1 %1019 }
  0xbd   : > { %v886_v25 = vsel %vm884_vm9, %v875_v20, %v877_v23  ;;  %857 = vmatprep.mubr.f32.mxu0 %v1656_v4 }
  0xbe   : > { %1581 = vmatprep.subr.msk.mxu1 %vm1763_vm4, %v886_v25 }
  0xc0   : > { %v1022_v27 = vpop.permute.xlu0 %1021  ;;  %1574 = vmatmul.mubr.msk.f32.gmra.mxu0 %vm252_vm1, %v1570_v26  ;;  %v873_v28 = vpop.permute.xlu1 %872 }
  0xc1   : > { %v1027_v33 = vsel %vm1023_vm10, %v1020_v24, %v1022_v27  ;;  %v885_v34 = vsel %vm884_vm9, %v873_v28, %v875_v20  ;;  %1117 = vmatprep.mubr.f32.mxu0 %v1656_v4 }
  0xc2   : > { %1582 = vmatpush1.msk.msra.mxu1 %vm1789_vm6, %v885_v34  ;;  %1591 = vmatprep.subr.msk.mxu0 %vm1759_vm3, %v1027_v33 }
  0xc3   : > { %1583 = vmatmul.mubr.msk.f32.vlgmr.msra.gmra.mxu1 %vm252_vm1, %v1575_v32 }
  0xc4   : > { %v1018_v35 = vpop.permute.xlu0 %1017  ;;  %v1014_v36 = vpop.permute.xlu1 %1013  ;;  %984 = vmatprep.mubr.f32.mxu1 %v1656_v4 }
  0xc5   : > { %v1026_v39 = vsel %vm1023_vm10, %v1018_v35, %v1020_v24 }
  0xc6   : > { %1592 = vmatpush1.msk.msra.mxu0 %vm1767_vm5, %v1026_v39 }
  0xc7   : > { %1584 = vmatmul.mubr.msk.f32.gmra.mxu1 %vm252_vm1, %v1576_v38 }
  0xc8   : > { %v1016_v40 = vpop.permute.xlu0 %1015  ;;  %v1012_v41 = vpop.permute.xlu1 %1011  ;;  %990 = vmatprep.mubr.f32.mxu1 %v1656_v4 }
  0xc9   : > { %v1025_v43 = vsel %vm1023_vm10, %v1014_v36, %v1016_v40  ;;  %v1024_v44 = vsel %vm1023_vm10, %v1012_v41, %v1014_v36 }
  0xca   : > { %1593 = vmatprep.subr.msk.mxu0 %vm1759_vm3, %v1025_v43 }
  0xcb   : > { %1585 = vmatmul.mubr.msk.f32.gmra.mxu1 %vm252_vm1, %v1577_v42  ;;  %1594 = vmatpush1.msk.msra.mxu0 %vm1767_vm5, %v1024_v44 }
  0xcc   : > { %v1164_v46 = vpop.permute.xlu0 %1163  ;;  %1595 = vmatmul.mubr.msk.f32.vlgmr.msra.gmra.mxu0 %vm252_vm1, %v1587_v45  ;;  %v1166_v47 = vpop.permute.xlu1 %1165  ;;  %996 = vmatprep.mubr.f32.mxu1 %v1656_v4 }
  0xcd   : > { %v1171_v49 = vsel %vm1167_vm11, %v1164_v46, %v1166_v47  ;;  %1123 = vmatprep.mubr.f32.mxu0 %v1656_v4 }
  0xce   : > { %1216 = vmatprep.subr.mxu1 %v1171_v49 }
  0xcf   : > { %1586 = vmatmul.mubr.msk.f32.gmra.mxu1 %vm252_vm1, %v1578_v48 }
  0xd0   : > { %v1162_v31 = vpop.permute.xlu0 %1161  ;;  %1596 = vmatmul.mubr.msk.f32.gmra.mxu0 %vm252_vm1, %v1588_v29  ;;  %v1158_v50 = vpop.permute.xlu1 %1157  ;;  %1252 = vmatprep.mubr.f32.mxu1 %v1656_v4 }
  0xd1   : > { %v1170_v51 = vsel %vm1167_vm11, %v1162_v31, %v1164_v46  ;;  %1129 = vmatprep.mubr.f32.mxu0 %v1656_v4 }
  0xd2   : > { %1217 = vmatpush1.msra.mxu1 %v1170_v51 }
  0xd4   : > { %v1160_v53 = vpop.permute.xlu0 %1159  ;;  %1597 = vmatmul.mubr.msk.f32.gmra.mxu0 %vm252_vm1, %v1589_v52  ;;  %v1294_v54 = vpop.permute.xlu1 %1293 }
  0xd5   : > { %v1169_v55 = vsel %vm1167_vm11, %v1158_v50, %v1160_v53  ;;  %1135 = vmatprep.mubr.f32.mxu0 %v1656_v4 }
  0xd6   : > { %1218 = vmatprep.subr.mxu1 %v1169_v55 }
  0xd8   : > { %v1296_v57 = vpop.permute.xlu0 %1295  ;;  %1598 = vmatmul.mubr.msk.f32.gmra.mxu0 %vm252_vm1, %v1590_v56  ;;  %v1156_v58 = vpop.permute.xlu1 %1155 }
  0xd9   : > { %v1301_v60 = vsel %vm1297_vm12, %v1294_v54, %v1296_v57  ;;  %v1168_v61 = vsel %vm1167_vm11, %v1156_v58, %v1158_v50  ;;  %1391 = vmatprep.mubr.f32.mxu0 %v1656_v4 }
  0xda   : > { %1219 = vmatpush1.msra.mxu1 %v1168_v61  ;;  %1611 = vmatprep.subr.msk.mxu0 %vm1763_vm4, %v1301_v60 }
  0xdb   : > { %1603 = vmatmul.mubr.msk.f32.vlgmr.msra.gmra.mxu1 %vm252_vm1, %v1599_v59 }
  0xdc   : > { %v1292_v62 = vpop.permute.xlu0 %1291  ;;  %v1288_v63 = vpop.permute.xlu1 %1287  ;;  %1258 = vmatprep.mubr.f32.mxu1 %v1656_v4 }
  0xdd   : > { %v1300_v1 = vsel %vm1297_vm12, %v1292_v62, %v1294_v54 }
  0xde   : > { %1612 = vmatpush1.msk.msra.mxu0 %vm1789_vm6, %v1300_v1 }
  0xdf   : > { %1604 = vmatmul.mubr.msk.f32.gmra.mxu1 %vm252_vm1, %v1600_v0 }
  0xe0   : > { %v1290_v2 = vpop.permute.xlu0 %1289  ;;  %v1286_v3 = vpop.permute.xlu1 %1285  ;;  %1264 = vmatprep.mubr.f32.mxu1 %v1656_v4 }
  0xe1   : > { %v1299_v6 = vsel %vm1297_vm12, %v1288_v63, %v1290_v2  ;;  %v1298_v7 = vsel %vm1297_vm12, %v1286_v3, %v1288_v63 }
  0xe2   : > { %1613 = vmatprep.subr.msk.mxu0 %vm1763_vm4, %v1299_v6 }
  0xe3   : > { %1605 = vmatmul.mubr.msk.f32.gmra.mxu1 %vm252_vm1, %v1601_v5  ;;  %1614 = vmatpush1.msk.msra.mxu0 %vm1789_vm6, %v1298_v7 }
  0xe4   : > { %1615 = vmatmul.mubr.msk.f32.vlgmr.msra.gmra.mxu0 %vm252_vm1, %v1607_v8  ;;  %1270 = vmatprep.mubr.f32.mxu1 %v1656_v4 }
  0xe5   : > { %1397 = vmatprep.mubr.f32.mxu0 %v1656_v4 }
  0xe7   : > { %1606 = vmatmul.mubr.msk.f32.gmra.mxu1 %vm252_vm1, %v1602_v9 }
  0xe8   : > { %1616 = vmatmul.mubr.msk.f32.gmra.mxu0 %vm252_vm1, %v1608_v30 }
  0xe9   : > { %1403 = vmatprep.mubr.f32.mxu0 %v1656_v4 }
  0xec   : > { %1617 = vmatmul.mubr.msk.f32.gmra.mxu0 %vm252_vm1, %v1609_v37 }
  0xed   : > { %1409 = vmatprep.mubr.f32.mxu0 %v1656_v4 }
  0xf0   : > { %1618 = vmatmul.mubr.msk.f32.gmra.mxu0 %vm252_vm1, %v1610_v10 }
 0x150   : > { %v2027_v11 = vpop.f32.mrf.mxu1  ;;  %v331_v12 = vpop.f32.mrf.mxu0 }
 0x152   : > { %v2029_v13 = vpop.f32.mrf.mxu1  ;;  %v333_v14 = vpop.f32.mrf.mxu0 }
 0x154   : > { %v2031_v15 = vpop.f32.mrf.mxu1  ;;  %v337_v16 = vpop.f32.mrf.mxu0 }
 0x156   : > { %v2033_v17 = vpop.f32.mrf.mxu1  ;;  %v339_v19 = vpop.f32.mrf.mxu0 }
 0x158   : > { %v432_v18 = vpop.f32.mrf.mxu1 }
 0x159   : > { %v433_v62 = vadd.f32 %v432_v18, %v331_v12 }
 0x15a   : > { %v434_v4 = vpop.f32.mrf.mxu1 }
 0x15b   : > { %v435_v63 = vadd.f32 %v434_v4, %v333_v14 }
 0x15c   : > { %v438_v20 = vpop.f32.mrf.mxu1  ;;  %v567_v21 = vpop.f32.mrf.mxu0 }
 0x15d   : > { %v439_v2 = vadd.f32 %v438_v20, %v337_v16  ;;  %v590_v3 = vadd.f32 %v567_v21, %v433_v62 }
 0x15e   : > { %v440_v22 = vpop.f32.mrf.mxu1  ;;  %v569_v23 = vpop.f32.mrf.mxu0 }
 0x15f   : > { %v441_v5 = vadd.f32 %v440_v22, %v339_v19  ;;  %v591_v6 = vadd.f32 %v569_v23, %v435_v63 }
 0x160   : > { %v444_v24 = vpop.f32.mrf.mxu1  ;;  %v573_v25 = vpop.f32.mrf.mxu0 }
 0x161   : > { %v592_v9 = vadd.f32 %v573_v25, %v439_v2  ;;  %v445_v10 = vadd.f32 %v444_v24, %v2027_v11 }
 0x162   : > { %v446_v26 = vpop.f32.mrf.mxu1  ;;  %v575_v27 = vpop.f32.mrf.mxu0 }
 0x163   : > { %v447_v4 = vadd.f32 %v446_v26, %v2029_v13 }
 0x164   : > { %v450_v28 = vpop.f32.mrf.mxu1  ;;  %v579_v32 = vpop.f32.mrf.mxu0 }
 0x165   : > { %v451_v22 = vadd.f32 %v450_v28, %v2031_v15  ;;  %v594_v23 = vadd.f32 %v579_v32, %v445_v10 }
 0x166   : > { %v452_v33 = vpop.f32.mrf.mxu1  ;;  %v581_v34 = vpop.f32.mrf.mxu0 }
 0x168   : > { %v2035_v38 = vpop.f32.mrf.mxu0 }
 0x169   : > { %v596_v15 = vadd.f32 %v2035_v38, %v451_v22 }
 0x16a   : > { %v2037_v41 = vpop.f32.mrf.mxu0 }
 0x16b   : > { %v706_v35 = vpop.f32.mrf.mxu1 }
 0x16c   : > { %v729_v30 = vadd.f32 %v706_v35, %v590_v3 }
 0x16d   : > { %v708_v36 = vpop.f32.mrf.mxu1 }
 0x16e   : > { %v730_v12 = vadd.f32 %v708_v36, %v591_v6  ;;  %v595_v36 = vadd.f32 %v581_v34, %v447_v4 }
 0x16f   : > { %v712_v39 = vpop.f32.mrf.mxu1 }
 0x170   : > { %v731_v16 = vadd.f32 %v712_v39, %v592_v9 }
 0x171   : > { %v714_v40 = vpop.f32.mrf.mxu1 }
 0x173   : > { %v718_v43 = vpop.f32.mrf.mxu1 }
 0x174   : > { %v841_v42 = vpop.f32.mrf.mxu0 }
 0x175   : > { %v720_v46 = vpop.f32.mrf.mxu1  ;;  %v864_v14 = vadd.f32 %v841_v42, %v729_v30  ;;  %v733_v42 = vadd.f32 %v718_v43, %v594_v23 }
 0x176   : > { %v843_v44 = vpop.f32.mrf.mxu0  ;;  %v734_v28 = vadd.f32 %v720_v46, %v595_v36 }
 0x177   : > { %v2039_v48 = vpop.f32.mrf.mxu1  ;;  %v865_v19 = vadd.f32 %v843_v44, %v730_v12 }
 0x178   : > { %v847_v45 = vpop.f32.mrf.mxu0  ;;  %v735_v34 = vadd.f32 %v2039_v48, %v596_v15 }
 0x179   : > { %v2041_v29 = vpop.f32.mrf.mxu1  ;;  %v866_v35 = vadd.f32 %v847_v45, %v731_v16  ;;  %v1431_v45 = vpop.permute.xlu0 %1430 }
 0x17a   : > { %v849_v47 = vpop.f32.mrf.mxu0 }
 0x17c   : > { %v853_v49 = vpop.f32.mrf.mxu0 }
 0x17d   : > { %v868_v32 = vadd.f32 %v853_v49, %v733_v42 }
 0x17e   : > { %v2043_v31 = vpop.f32.mrf.mxu0 }
 0x17f   : > { %v869_v43 = vadd.f32 %v2043_v31, %v734_v28 }
 0x180   : > { %v2045_v52 = vpop.f32.mrf.mxu0 }
 0x181   : > { %v870_v48 = vadd.f32 %v2045_v52, %v735_v34 }
 0x182   : > { %v2047_v55 = vpop.f32.mrf.mxu0 }
 0x183   : > { %v980_v50 = vpop.f32.mrf.mxu1  ;;  %2107 = vst [vmem:[#allocation2_spill] sm:$0xff] %v2047_v55  ;;  %v593_v55 = vadd.f32 %v575_v27, %v441_v5  ;;  %v453_v27 = vadd.f32 %v452_v33, %v2033_v17  ;;  %v1436_v17 = vpop.permute.xlu1 %1435 }
 0x184   : > { %v1003_v20 = vadd.f32 %v980_v50, %v864_v14 }
 0x185   : > { %v982_v51 = vpop.f32.mrf.mxu1  ;;  %v732_v25 = vadd.f32 %v714_v40, %v593_v55  ;;  %v597_v33 = vadd.f32 %v2037_v41, %v453_v27 }
 0x186   : > { %v1004_v62 = vadd.f32 %v982_v51, %v865_v19 }
 0x187   : > { %v986_v53 = vpop.f32.mrf.mxu1  ;;  %v867_v26 = vadd.f32 %v849_v47, %v732_v25  ;;  %v736_v41 = vadd.f32 %v2041_v29, %v597_v33  ;;  %v1441_v4 = vpop.permute.xlu1 %1440 }
 0x188   : > { %v1005_v63 = vadd.f32 %v986_v53, %v866_v35 }
 0x189   : > { %v988_v54 = vpop.f32.mrf.mxu1 }
 0x18a   : > { %v1006_v51 = vadd.f32 %v988_v54, %v867_v26  ;;  %v2109_v9 = vld [vmem:[#allocation2_spill] sm:$0xff] }
 0x18b   : > { %v992_v57 = vpop.f32.mrf.mxu1 }
 0x18c   : > { %v1119_v56 = vpop.f32.mrf.mxu0  ;;  %v1007_v47 = vadd.f32 %v992_v57, %v868_v32 }
 0x18d   : > { %v2049_v60 = vpop.f32.mrf.mxu1  ;;  %v1142_v11 = vadd.f32 %v1119_v56, %v1003_v20 }
 0x18e   : > { %v1121_v58 = vpop.f32.mrf.mxu0  ;;  %v1008_v31 = vadd.f32 %v2049_v60, %v869_v43 }
 0x18f   : > { %v2051_v0 = vpop.f32.mrf.mxu1  ;;  %v1143_v39 = vadd.f32 %v1121_v58, %v1004_v62 }
 0x190   : > { %v1125_v59 = vpop.f32.mrf.mxu0  ;;  %2108 = vst [vmem:[#allocation3_spill] sm:$0xff] %v2051_v0 }
 0x191   : > { %v2055_v7 = vpop.f32.mrf.mxu1  ;;  %v1144_v55 = vadd.f32 %v1125_v59, %v1005_v63 }
 0x192   : > { %v1127_v61 = vpop.f32.mrf.mxu0 }
 0x193   : > { %v1145_v46 = vadd.f32 %v1127_v61, %v1006_v51  ;;  %v871_v61 = vadd.f32 %v2109_v9, %v736_v41 }
 0x194   : > { %v2053_v1 = vpop.f32.mrf.mxu0 }
 0x195   : > { %v1146_v59 = vadd.f32 %v2053_v1, %v1007_v47  ;;  %v1010_v1 = vadd.f32 %v2055_v7, %v871_v61 }
 0x196   : > { %v2057_v8 = vpop.f32.mrf.mxu0 }
 0x197   : > { %v2110_v30 = vld [vmem:[#allocation3_spill] sm:$0xff]  ;;  %v1147_v29 = vadd.f32 %v2057_v8, %v1008_v31 }
 0x198   : > { %v2061_v0 = vpop.f32.mrf.mxu0 }
 0x19a   : > { %v1139_v13 = vpop.f32.mrf.mxu0 }
 0x19b   : > { %v1254_v37 = vpop.f32.mrf.mxu1  ;;  %v1149_v8 = vadd.f32 %v1139_v13, %v1010_v1 }
 0x19c   : > { %v1277_v44 = vadd.f32 %v1254_v37, %v1142_v11  ;;  %v1009_v37 = vadd.f32 %v2110_v30, %v870_v48 }
 0x19d   : > { %v1256_v18 = vpop.f32.mrf.mxu1 }
 0x19e   : > { %v1278_v56 = vadd.f32 %v1256_v18, %v1143_v39  ;;  %v1148_v16 = vadd.f32 %v2061_v0, %v1009_v37  ;;  %v1446_v0 = vpop.permute.xlu0 %1445 }
 0x19f   : > { %v1260_v21 = vpop.f32.mrf.mxu1 }
 0x1a0   : > { %v1279_v49 = vadd.f32 %v1260_v21, %v1144_v55 }
 0x1a1   : > { %v1262_v24 = vpop.f32.mrf.mxu1 }
 0x1a2   : > { %v1280_v3 = vadd.f32 %v1262_v24, %v1145_v46 }
 0x1a3   : > { %v1266_v50 = vpop.f32.mrf.mxu1 }
 0x1a4   : > { %v1393_v40 = vpop.f32.mrf.mxu0  ;;  %v1281_v14 = vadd.f32 %v1266_v50, %v1146_v59 }
 0x1a5   : > { %v1416_v2 = vadd.f32 %v1393_v40, %v1277_v44  ;;  %v1268_v53 = vpop.f32.mrf.mxu1 }
 0x1a6   : > { %v1395_v38 = vpop.f32.mrf.mxu0  ;;  %v1282_v19 = vadd.f32 %v1268_v53, %v1147_v29 }
 0x1a7   : > { %v1448_v54 = vadd.f32 %v1431_v45, %v1416_v2  ;;  %v1417_v58 = vadd.f32 %v1395_v38, %v1278_v56  ;;  %v1272_v10 = vpop.f32.mrf.mxu1 }
 0x1a8   : > { %v1399_v57 = vpop.f32.mrf.mxu0  ;;  %v1283_v25 = vadd.f32 %v1272_v10, %v1148_v16 }
 0x1a9   : > { %1456 = vst [vmem:[%s2073_s6] sm:$0xff] %v1448_v54  ;;  %v1449_v5 = vadd.f32 %v1431_v45, %v1417_v58  ;;  %v1418_v6 = vadd.f32 %v1399_v57, %v1279_v49  ;;  %v1274_v22 = vpop.f32.mrf.mxu1 }
 0x1aa   : > { %v1401_v12 = vpop.f32.mrf.mxu0  ;;  %v1284_v11 = vadd.f32 %v1274_v22, %v1149_v8 }
 0x1ab   : > { %1457 = vst [vmem:[%s2073_s6 + $0x8] sm:$0xff] %v1449_v5  ;;  %v1419_v52 = vadd.f32 %v1401_v12, %v1280_v3  ;;  %v1450_v60 = vadd.f32 %v1436_v17, %v1418_v6 }
 0x1ac   : > { %v1405_v18 = vpop.f32.mrf.mxu0 }
 0x1ad   : > { %v1451_v20 = vadd.f32 %v1436_v17, %v1419_v52  ;;  %1458 = vst [vmem:[%s2073_s6 + $0x10] sm:$0xff] %v1450_v60  ;;  %v1420_v21 = vadd.f32 %v1405_v18, %v1281_v14 }
 0x1ae   : > { %v1407_v23 = vpop.f32.mrf.mxu0 }
 0x1af   : > { %1459 = vst [vmem:[%s2073_s6 + $0x18] sm:$0xff] %v1451_v20  ;;  %v1421_v35 = vadd.f32 %v1407_v23, %v1282_v19  ;;  %v1452_v62 = vadd.f32 %v1441_v4, %v1420_v21 }
 0x1b0   : > { %v1411_v7 = vpop.f32.mrf.mxu0 }
 0x1b1   : > { %v1453_v24 = vadd.f32 %v1441_v4, %v1421_v35  ;;  %1460 = vst [vmem:[%s2073_s6 + $0x20] sm:$0xff] %v1452_v62  ;;  %v1422_v27 = vadd.f32 %v1411_v7, %v1283_v25 }
 0x1b2   : > { %v1413_v36 = vpop.f32.mrf.mxu0 }
 0x1b3   : > { %1461 = vst [vmem:[%s2073_s6 + $0x28] sm:$0xff] %v1453_v24  ;;  %v1454_v42 = vadd.f32 %v1446_v0, %v1422_v27  ;;  %v1423_v26 = vadd.f32 %v1413_v36, %v1284_v11 }
 0x1b5   : > { %1462 = vst [vmem:[%s2073_s6 + $0x30] sm:$0xff] %v1454_v42  ;;  %v1455_v63 = vadd.f32 %v1446_v0, %v1423_v26 }
 0x1b7   : > { %1463 = vst [vmem:[%s2073_s6 + $0x38] sm:$0xff] %v1455_v63 }
 0x1b8 PF: > { %s13_s12 = sadd.s32 1, %s1653_s12  }
 0x1b9   : > { %p10_p4 = scmp.ge.s32.totalorder %s13_s12, 4  }
 0x1bb   :  { %12 = sbr.rel (!%p10_p4) target bundleno = 1 (0x1), region = 70 }

</bundles_post_ra>
